<compile_context>
chip_gen: v6e
topology: v6e:2x2x1
jax: 0.10.0
libtpu: 0.0.40
codegen_flags: <defaults>
</compile_context>

<pallas_src>
import functools

import jax
import jax.numpy as jnp
from jax.experimental import pallas as pl
from jax.experimental.pallas import tpu as pltpu

EPS = 1e-12  # F.normalize default eps


def _round_up(x, m):
    return (x + m - 1) // m * m


def _linear_embed_kernel(feat_ref, w_ref, b_ref, out_ref, *, normalize):
    # feat: (TB, F) bf16, w: (F, E) bf16, b: (1, E) f32, out: (TB, E) f32
    embed = jnp.dot(feat_ref[...], w_ref[...],
                    preferred_element_type=jnp.float32)       # MXU, f32 accumulate
    embed = embed + b_ref[...]                                # (TB, E) f32

    if normalize:
        # Per-row L2 normalize: embed / max(||embed||_2, eps).
        sumsq = jnp.sum(embed * embed, axis=1, keepdims=True)  # (TB, 1) lane reduce
        norm = jnp.sqrt(sumsq)
        inv = pl.reciprocal(jnp.maximum(norm, EPS), approx=True)  # EUP, ~free
        embed = embed * inv                                    # single broadcast mul

    out_ref[...] = embed.astype(out_ref.dtype)


@functools.partial(jax.jit, static_argnames=("normalize",))
def linear_embedding(x_nchw, w, b, *, normalize=True):
    """x_nchw: (B, C, H, W) with C*H*W == F; w: (F, E) (transposed PyTorch
    nn.Linear weight (E, F)); b: (E,). Returns (B, E) float32."""
    B = x_nchw.shape[0]
    feat = x_nchw.reshape(B, -1)                  # base(input).view(B, -1)
    F_dim = feat.shape[1]
    E = w.shape[1]
    assert w.shape[0] == F_dim

    # bf16 MXU inputs; epilogue stays f32.
    feat_bf = feat.astype(jnp.bfloat16)
    w_bf = w.astype(jnp.bfloat16)
    b2d = b.reshape(1, E).astype(jnp.float32)

    # Batch tile: fill the MXU M dim for large B, otherwise pad B up to a
    # sublane-friendly multiple of 16 and run a single grid step.
    TB = 256 if B >= 256 else _round_up(B, 16)
    B_pad = _round_up(B, TB)
    if B_pad != B:
        feat_bf = jnp.pad(feat_bf, ((0, B_pad - B), (0, 0)))

    grid = (B_pad // TB,)

    # VMEM budget: double-buffered feat tile + (possibly double-buffered)
    # resident W + bias + double-buffered out, plus headroom.  Clamp so it
    # stays within v7x's 64 MiB scoped VMEM.
    vmem_bytes = (2 * TB * F_dim * 2          # feat tiles (bf16)
                  + 2 * F_dim * E * 2         # W (bf16)
                  + 2 * E * 4                 # bias (f32)
                  + 2 * TB * E * 4            # out tiles (f32)
                  + (4 << 20))                # headroom
    vmem_bytes = int(min(max(vmem_bytes, 16 << 20), 100 << 20))

    out = pl.pallas_call(
        functools.partial(_linear_embed_kernel, normalize=normalize),
        out_shape=jax.ShapeDtypeStruct((B_pad, E), jnp.float32),
        grid_spec=pltpu.PrefetchScalarGridSpec(
            num_scalar_prefetch=0,
            grid=grid,
            in_specs=[
                pl.BlockSpec((TB, F_dim), lambda i: (i, 0)),   # feat: pipelined tiles
                pl.BlockSpec((F_dim, E), lambda i: (0, 0)),    # W: resident
                pl.BlockSpec((1, E), lambda i: (0, 0)),        # bias: resident
            ],
            out_specs=pl.BlockSpec((TB, E), lambda i: (i, 0)),
        ),
        compiler_params=pltpu.CompilerParams(
            dimension_semantics=("parallel",),   # shard batch tiles across TCs (v7x)
            vmem_limit_bytes=vmem_bytes,
        ),
    )(feat_bf, w_bf, b2d)

    return out[:B] if B_pad != B else out


def _reference(x_nchw, w, b, normalize=True):
    feat = x_nchw.reshape(x_nchw.shape[0], -1).astype(jnp.float32)
    embed = feat @ w + b
    if normalize:
        norm = jnp.sqrt(jnp.sum(embed * embed, axis=1, keepdims=True))
        embed = embed / jnp.maximum(norm, EPS)
    return embed


if __name__ == "__main__":
    # Shapes consistent with the module defaults: output_size=512, embedding_size=128.
    B, C, H, W = 2, 2, 16, 16                 # C*H*W = 512 = output_size
    output_size, embedding_size = C * H * W, 128

    key = jax.random.PRNGKey(0)
    kx, kw, kb = jax.random.split(key, 3)

    x = jax.random.normal(kx, (B, C, H, W), dtype=jnp.float32)
    # PyTorch nn.Linear params: weight (E, F), bias (E); we store the weight
    # transposed as (F, E) for the kernel's feat @ W layout.
    bound = 1.0 / (output_size ** 0.5)
    w = jax.random.uniform(kw, (output_size, embedding_size),
                           minval=-bound, maxval=bound, dtype=jnp.float32)
    b = jax.random.uniform(kb, (embedding_size,),
                           minval=-bound, maxval=bound, dtype=jnp.float32)

    out = linear_embedding(x, w, b)
    out = jax.block_until_ready(out)

    ref = _reference(x, w, b)
    assert out.shape == (B, embedding_size)
    # bf16 MXU inputs + approx EUP reciprocal => compare against the f32 module
    # reference with a correspondingly loosened tolerance.
    assert jnp.allclose(out, ref, atol=1e-2, rtol=1e-2), "mismatch vs reference"
    # Rows must be (approximately) unit L2 norm after F.normalize.
    assert jnp.allclose(jnp.linalg.norm(out, axis=1), 1.0, atol=1e-2), "rows not unit norm"

    print("KERNEL_OK")
</pallas_src>

<mosaic_0001>
module attributes {stable_mosaic.version = 11 : i64} {
  func.func @_linear_embed_kernel(%arg0: i32, %arg1: memref<16x512xbf16, #tpu.memory_space<vmem>>, %arg2: memref<512x128xbf16, #tpu.memory_space<vmem>>, %arg3: memref<1x128xf32, #tpu.memory_space<vmem>>, %arg4: memref<16x128xf32, #tpu.memory_space<vmem>>) attributes {dimension_semantics = [#tpu.dimension_semantics<parallel>], iteration_bounds = array<i64: 1>, scalar_prefetch = 0 : i64, scratch_operands = 0 : i64, tpu.core_type = #tpu.core_type<tc>, window_params = [{transform_indices = @transform_0, window_bounds = array<i64: 16, 512>}, {pipeline_mode = #tpu.pipeline_mode<synchronous>, transform_indices = @transform_1, window_bounds = array<i64: 512, 128>}, {pipeline_mode = #tpu.pipeline_mode<synchronous>, transform_indices = @transform_2, window_bounds = array<i64: 1, 128>}, {transform_indices = @transform_3, window_bounds = array<i64: 16, 128>}]} {
    %c0 = arith.constant 0 : index
    %c0_0 = arith.constant 0 : index
    %0 = vector.load %arg1[%c0, %c0_0] : memref<16x512xbf16, #tpu.memory_space<vmem>>, vector<16x512xbf16>
    %c0_1 = arith.constant 0 : index
    %c0_2 = arith.constant 0 : index
    %1 = vector.load %arg2[%c0_1, %c0_2] : memref<512x128xbf16, #tpu.memory_space<vmem>>, vector<512x128xbf16>
    %cst = arith.constant dense<0.000000e+00> : vector<16x128xf32>
    %2 = tpu.matmul %0, %1, %cst {dimension_numbers = #tpu.dot_dimension_numbers<[1], [0], [0], [1], [0, 0, 1, 1], [], []>} : vector<16x512xbf16>, vector<512x128xbf16>, vector<16x128xf32> -> vector<16x128xf32>
    %c0_3 = arith.constant 0 : index
    %c0_4 = arith.constant 0 : index
    %3 = vector.load %arg3[%c0_3, %c0_4] : memref<1x128xf32, #tpu.memory_space<vmem>>, vector<1x128xf32>
    %4 = vector.broadcast %3 : vector<1x128xf32> to vector<16x128xf32>
    %5 = arith.addf %2, %4 : vector<16x128xf32>
    %6 = arith.mulf %5, %5 : vector<16x128xf32>
    %cst_5 = arith.constant dense<0.000000e+00> : vector<16xf32>
    %7 = vector.multi_reduction <add>, %6, %cst_5 [1] : vector<16x128xf32> to vector<16xf32>
    %8 = vector.shape_cast %7 : vector<16xf32> to vector<16x1xf32>
    %9 = math.sqrt %8 : vector<16x1xf32>
    %cst_6 = arith.constant 9.99999996E-13 : f32
    %10 = vector.broadcast %cst_6 : f32 to vector<16x1xf32>
    %11 = arith.maximumf %9, %10 : vector<16x1xf32>
    %12 = tpu.reciprocal %11 {approx = true} : vector<16x1xf32> -> vector<16x1xf32>
    %13 = vector.broadcast %12 : vector<16x1xf32> to vector<16x128xf32>
    %14 = arith.mulf %5, %13 : vector<16x128xf32>
    %c0_7 = arith.constant 0 : index
    %c0_8 = arith.constant 0 : index
    %15 = vector.load %arg4[%c0_7, %c0_8] : memref<16x128xf32, #tpu.memory_space<vmem>>, vector<16x128xf32>
    tpu.vector_store %arg4[%c0_7, %c0_8], %14 {strides = array<i32>} : memref<16x128xf32, #tpu.memory_space<vmem>>, vector<16x128xf32>,
    return
  }
  func.func @transform_0(%arg0: i32) -> (i32, i32) {
    %c0_i32 = arith.constant 0 : i32
    %c0_i32_0 = arith.constant 0 : i32
    return %arg0, %c0_i32 : i32, i32
  }
  func.func @transform_1(%arg0: i32) -> (i32, i32) {
    %c0_i32 = arith.constant 0 : i32
    %c0_i32_0 = arith.constant 0 : i32
    %c0_i32_1 = arith.constant 0 : i32
    return %c0_i32, %c0_i32_0 : i32, i32
  }
  func.func @transform_2(%arg0: i32) -> (i32, i32) {
    %c0_i32 = arith.constant 0 : i32
    %c0_i32_0 = arith.constant 0 : i32
    %c0_i32_1 = arith.constant 0 : i32
    return %c0_i32, %c0_i32_0 : i32, i32
  }
  func.func @transform_3(%arg0: i32) -> (i32, i32) {
    %c0_i32 = arith.constant 0 : i32
    %c0_i32_0 = arith.constant 0 : i32
    return %arg0, %c0_i32 : i32, i32
  }
}

</mosaic_0001>

<bundles_post_ra>
// kernel: linear_embedding.1
= control target key start
LH: loop header
LB: loop body
LE: loop exit
PB: predicated region body
PF: predicated region fallthrough
CT: control target
= control target key end

     0   :  { %s680_s1 = inlined_call_operand.vmem [shape: bf16[512,128], index: 1, kind: input, shape index: {}]   ;;  %s681_s0 = inlined_call_operand.vmem [shape: bf16[16,512], index: 0, kind: input, shape index: {}]   ;;  %s682_s2 = inlined_call_operand.vmem [shape: f32[1,128], index: 2, kind: input, shape index: {}]   ;;  %s683_s3 = inlined_call_operand.vmem [shape: f32[16,128], index: 3, kind: output, shape index: {}]  }
   0x1   :  { %v497_v0 = vld [vmem:[%s680_s1 + $0x78] sm:$0xff]   ;;  %v501_v4 = vld [vmem:[%s680_s1 + $0x70] sm:$0xff]   ;;  %v505_v8 = vld [vmem:[%s680_s1 + $0x68] sm:$0xff]  }
   0x2   :  { %v498_v1 = vld [vmem:[%s680_s1 + $0xf8] sm:$0xff]   ;;  %453 = vmatprep.subr.bf16.mxu0 %v497_v0  ;;  %v502_v5 = vld [vmem:[%s680_s1 + $0xf0] sm:$0xff]   ;;  %v506_v9 = vld [vmem:[%s680_s1 + $0xe8] sm:$0xff]  }
   0x3   :  { %v499_v2 = vld [vmem:[%s680_s1 + $0x38] sm:$0xff]   ;;  %475 = vmatprep.subr.bf16.mxu1 %v498_v1  ;;  %v503_v6 = vld [vmem:[%s680_s1 + $0x30] sm:$0xff]   ;;  %v507_v10 = vld [vmem:[%s680_s1 + $0x28] sm:$0xff]  }
   0x4   :  { %v500_v3 = vld [vmem:[%s680_s1 + $0xb8] sm:$0xff]   ;;  %454 = vmatpush3.bf16.msra.mxu0 %v499_v2  ;;  %v504_v7 = vld [vmem:[%s680_s1 + $0xb0] sm:$0xff]   ;;  %v508_v11 = vld [vmem:[%s680_s1 + $0xa8] sm:$0xff]  }
   0x5   :  { %476 = vmatpush3.bf16.msra.mxu1 %v500_v3  ;;  %455 = vmatprep.subr.bf16.mxu0 %v501_v4  ;;  %v509_v12 = vld [vmem:[%s680_s1 + $0x60] sm:$0xff]   ;;  %v513_v16 = vld [vmem:[%s680_s1 + $0x58] sm:$0xff]   ;;  %v517_v20 = vld [vmem:[%s680_s1 + $0x50] sm:$0xff]  }
   0x6   :  { %477 = vmatprep.subr.bf16.mxu1 %v502_v5  ;;  %v510_v13 = vld [vmem:[%s680_s1 + $0xe0] sm:$0xff]   ;;  %v514_v17 = vld [vmem:[%s680_s1 + $0xd8] sm:$0xff]   ;;  %v518_v21 = vld [vmem:[%s680_s1 + $0xd0] sm:$0xff]  }
   0x7   :  { %v511_v14 = vld [vmem:[%s680_s1 + $0x20] sm:$0xff]   ;;  %v515_v18 = vld [vmem:[%s680_s1 + $0x18] sm:$0xff]   ;;  %v519_v22 = vld [vmem:[%s680_s1 + $0x10] sm:$0xff]  }
   0x8   :  { %456 = vmatpush3.bf16.msra.mxu0 %v503_v6  ;;  %v512_v15 = vld [vmem:[%s680_s1 + $0xa0] sm:$0xff]   ;;  %v516_v19 = vld [vmem:[%s680_s1 + $0x98] sm:$0xff]   ;;  %v520_v23 = vld [vmem:[%s680_s1 + $0x90] sm:$0xff]  }
   0x9   :  { %478 = vmatpush3.bf16.msra.mxu1 %v504_v7  ;;  %457 = vmatprep.subr.bf16.mxu0 %v505_v8  ;;  %v521_v24 = vld [vmem:[%s680_s1 + $0x48] sm:$0xff]   ;;  %v525_v28 = vld [vmem:[%s680_s1 + $0x40] sm:$0xff]  }
   0xa   :  { %479 = vmatprep.subr.bf16.mxu1 %v506_v9  ;;  %v522_v25 = vld [vmem:[%s680_s1 + $0xc8] sm:$0xff]   ;;  %v526_v29 = vld [vmem:[%s680_s1 + $0xc0] sm:$0xff]  }
   0xb   :  { %v523_v26 = vld [vmem:[%s680_s1 + $0x8] sm:$0xff]   ;;  %v527_v30 = vld [vmem:[%s680_s1] sm:$0xff]  }
   0xc   :  { %458 = vmatpush3.bf16.msra.mxu0 %v507_v10  ;;  %v524_v27 = vld [vmem:[%s680_s1 + $0x88] sm:$0xff]   ;;  %v528_v31 = vld [vmem:[%s680_s1 + $0x80] sm:$0xff]  }
   0xd   :  { %480 = vmatpush3.bf16.msra.mxu1 %v508_v11  ;;  %459 = vmatprep.subr.bf16.mxu0 %v509_v12  ;;  %v529_v32 = vld [vmem:[%s681_s0] ss:$16 sps:$4 sm:$0xff]   ;;  %v531_v33 = vld [vmem:[%s681_s0 + $0x4] ss:$16 sps:$4 sm:$0xff]   ;;  %v532_v34 = vld [vmem:[%s681_s0 + $0x8] ss:$16 sps:$4 sm:$0xff]  }
   0xe   :  { %481 = vmatprep.subr.bf16.mxu1 %v510_v13  ;;  %v534_v35 = vld [vmem:[%s681_s0 + $0xc] ss:$16 sps:$4 sm:$0xff]   ;;  %334 = vmatprep.mubr.bf16.mxu0 %v531_v33  ;;  %v416_v38 = vld [vmem:[%s682_s2] ss:$0 sm:$0xff] }
   0xf   :  { %375 = vmatprep.mubr.bf16.mxu1 %v534_v35 }
  0x10   :  { %460 = vmatpush3.bf16.msra.mxu0 %v511_v14 }
  0x11   :  { %482 = vmatpush3.bf16.msra.mxu1 %v512_v15  ;;  %461 = vmatprep.subr.bf16.mxu0 %v513_v16 }
  0x12   :  { %483 = vmatprep.subr.bf16.mxu1 %v514_v17 }
  0x14   :  { %462 = vmatpush3.bf16.msra.mxu0 %v515_v18 }
  0x15   :  { %484 = vmatpush3.bf16.msra.mxu1 %v516_v19  ;;  %463 = vmatprep.subr.bf16.mxu0 %v517_v20 }
  0x16   :  { %485 = vmatprep.subr.bf16.mxu1 %v518_v21 }
  0x18   :  { %464 = vmatpush3.bf16.msra.mxu0 %v519_v22 }
  0x19   :  { %486 = vmatpush3.bf16.msra.mxu1 %v520_v23  ;;  %465 = vmatprep.subr.bf16.mxu0 %v521_v24 }
  0x1a   :  { %487 = vmatprep.subr.bf16.mxu1 %v522_v25 }
  0x1c   :  { %466 = vmatpush3.bf16.msra.mxu0 %v523_v26 }
  0x1d   :  { %488 = vmatpush3.bf16.msra.mxu1 %v524_v27  ;;  %467 = vmatprep.subr.bf16.mxu0 %v525_v28 }
  0x1e   :  { %489 = vmatprep.subr.bf16.mxu1 %v526_v29 }
  0x20   :  { %468 = vmatpush3.bf16.msra.mxu0 %v527_v30 }
  0x21   :  { %490 = vmatpush3.bf16.msra.mxu1 %v528_v31 }
  0x23   :  { %335 = vmatmul.mubr.bf16.vlgmr.msra.gmra.mxu0 %v529_v32 }
  0x24   :  { %376 = vmatmul.mubr.bf16.vlgmr.msra.gmra.mxu1 %v532_v34 }
  0xe3   :  { %v469_v36 = vpop.f32.mrf.mxu0 }
  0xe4   :  { %v491_v37 = vpop.f32.mrf.mxu1 }
  0xe5   :  { %v470_v39 = vpop.f32.mrf.mxu0 }
  0xe6   :  { %v471_v40 = vadd.f32 %v470_v39, %v469_v36  ;;  %v492_v41 = vpop.f32.mrf.mxu1 }
  0xe7   :  { %v472_v42 = vpop.f32.mrf.mxu0  ;;  %v493_v44 = vadd.f32 %v492_v41, %v491_v37 }
  0xe8   :  { %v337_v43 = vadd.f32 %v471_v40, %v416_v38  ;;  %v494_v45 = vpop.f32.mrf.mxu1 }
  0xe9   :  { %v473_v46 = vpop.f32.mrf.mxu0 }
  0xea   :  { %v474_v47 = vadd.f32 %v473_v46, %v472_v42  ;;  %v495_v48 = vpop.f32.mrf.mxu1  ;;  %v378_v49 = vadd.f32 %v493_v44, %v337_v43 }
  0xeb   :  { %v496_v51 = vadd.f32 %v495_v48, %v494_v45 }
  0xec   :  { %v340_v50 = vadd.f32 %v474_v47, %v416_v38  ;;  %v384_v52 = vmul.f32 %v378_v49, %v378_v49 }
  0xee   :  { %v381_v53 = vadd.f32 %v496_v51, %v340_v50  ;;  %386 = vadd.xlane.f32.xlu0 %v384_v52 }
  0xf0   :  { %v385_v54 = vmul.f32 %v381_v53, %v381_v53 }
  0xf2   :  { %388 = vadd.xlane.f32.xlu0 %v385_v54 }
 0x177   :  { %v387_v55 = vpop.xlane.xlu0 %386 }
 0x178   :  { %535 = vrsqrt.f32 %v387_v55  ;;  %vm392_vm0 = vcmp.eq.f32.partialorder %v387_v55, inf  ;;  %v395_v59 = vand.u32 2147483648, %v387_v55  ;;  %vm394_vm1 = vcmp.eq.f32.partialorder %v387_v55, 0.0 }
 0x17b   :  { %v389_v56 = vpop.xlane.xlu0 %388 }
 0x17c   :  { %537 = vrsqrt.f32 %v389_v56  ;;  %vm399_vm2 = vcmp.eq.f32.partialorder %v389_v56, inf  ;;  %v402_v1 = vand.u32 2147483648, %v389_v56  ;;  %vm401_vm3 = vcmp.eq.f32.partialorder %v389_v56, 0.0 }
 0x185   :  { %v536_v57 = vpop.eup %535 }
 0x186   :  { %v391_v58 = vmul.f32 %v536_v57, %v387_v55 }
 0x188   :  { %v393_v60 = vsel %vm392_vm0, %v387_v55, %v391_v58 }
 0x189   :  { %v538_v61 = vpop.eup %537  ;;  %v396_v62 = vsel %vm394_vm1, %v395_v59, %v393_v60 }
 0x18a   :  { %v404_v63 = vmax.f32 %v396_v62, 1e-12  ;;  %v398_v0 = vmul.f32 %v538_v61, %v389_v56 }
 0x18c   :  { %539 = vrcp.f32 %v404_v63  ;;  %v400_v2 = vsel %vm399_vm2, %v389_v56, %v398_v0 }
 0x18d   :  { %v403_v3 = vsel %vm401_vm3, %v402_v1, %v400_v2 }
 0x18e   :  { %v405_v4 = vmax.f32 %v403_v3, 1e-12 }
 0x190   :  { %541 = vrcp.f32 %v405_v4 }
 0x199   :  { %v540_v5 = vpop.eup %539 }
 0x19a   :  { %v408_v6 = vmul.f32 %v540_v5, %v378_v49 }
 0x19c   :  { %410 = vst [vmem:[%s683_s3] sm:$0xff] %v408_v6 }
 0x19d   :  { %v542_v7 = vpop.eup %541 }
 0x19e   :  { %v409_v8 = vmul.f32 %v542_v7, %v381_v53 }
 0x1a0   :  { %411 = vst [vmem:[%s683_s3 + $0x8] sm:$0xff] %v409_v8 }

</bundles_post_ra>
